<compile_context>
chip_gen: v6e
topology: v6e:2x2x1
jax: 0.10.0
libtpu: 0.0.40
codegen_flags: <defaults>
</compile_context>

<pallas_src>
import functools

import jax
import jax.numpy as jnp
from jax import lax
from jax.experimental import pallas as pl
from jax.experimental.pallas import tpu as pltpu


def _tlstm_kernel(xz_ref, t_ref, ua_ref, wd_ref, bd_ref,
                  hs_ref, cs_ref, h_sc, c_sc, *, hidden_dim, chunk):
    """One grid step == `chunk` time steps of the TLSTM recurrence."""
    si = pl.program_id(1)          # sequence-chunk index (axis 1, 'arbitrary')

    # h_init / c_init default to zeros (matches the PyTorch default path).
    @pl.when(si == 0)
    def _():
        h_sc[...] = jnp.zeros_like(h_sc)
        c_sc[...] = jnp.zeros_like(c_sc)

    H = hidden_dim
    tb = h_sc.shape[0]

    # Weights stay resident in VMEM across the whole grid (constant index_map).
    ua = ua_ref[...]                                     # (H, 4H)
    wd = wd_ref[...]                                     # (H, H)
    # Hoist the bias broadcast out of the per-step loop (no CSE of broadcasts).
    bd = jnp.broadcast_to(bd_ref[...], (tb, H))          # (TB, H)

    def step(s, carry):
        h, c = carry
        xz = xz_ref[s]             # (TB, 4H)  == x @ W_all + (b_a + b_u), precomputed
        t = t_ref[s]               # (TB, 1)

        # c_st = sigmoid(W_d(c)); c = c - c_st + c_st * t
        c_st = jax.nn.sigmoid(
            jnp.dot(c, wd, preferred_element_type=jnp.float32) + bd)
        c_adj = c - c_st + c_st * t

        # outs = (x @ W_all + b) + h @ U_all     -> (TB, 4H)
        outs = xz + jnp.dot(h, ua, preferred_element_type=jnp.float32)

        # NOTE: for large models keep H a multiple of 128 so these slices fall
        # on lane-tile boundaries.
        f = jax.nn.sigmoid(outs[:, 0 * H:1 * H])
        i = jax.nn.sigmoid(outs[:, 1 * H:2 * H])
        o = jax.nn.sigmoid(outs[:, 2 * H:3 * H])
        g = jnp.tanh(outs[:, 3 * H:4 * H])

        c_t = f * c_adj + i * g
        new_h = o * jnp.tanh(c_t)

        hs_ref[s] = new_h
        cs_ref[s] = c_t
        return new_h, c_t

    h, c = lax.fori_loop(0, chunk, step, (h_sc[...], c_sc[...]), unroll=True)
    h_sc[...] = h
    c_sc[...] = c


def tlstm_forward(params, inputs, time_diffs, *, chunk=None, block_b=None):
    """inputs: (B, S, D) f32, time_diffs: (B, S) f32.

    Returns (outputs (B,S,O), (hs (B,S,H), cs (B,S,H))).
    """
    b, seq, d = inputs.shape
    H = params["wd"].shape[0]
    O = params["wo"].shape[1]

    if chunk is None:
        chunk = min(seq, 32)
    n_chunks = pl.cdiv(seq, chunk)
    seq_p = n_chunks * chunk

    if block_b is None:
        block_b = b                      # split (multiple of 8) to use 2 TCs on v7x
    assert b % block_b == 0, "block_b must divide batch"
    n_bb = b // block_b

    # ---- hoisted input projection: one big MXU matmul outside the recurrence.
    b_comb = params["ba"] + params["bu"]                       # fold the two biases
    xz = (inputs.astype(jnp.float32).reshape(b * seq, d) @ params["wa"] + b_comb)
    xz = xz.reshape(b, seq, 4 * H).transpose(1, 0, 2)          # (S, B, 4H)
    t_sm = time_diffs.astype(jnp.float32).transpose(1, 0)[..., None]   # (S, B, 1)

    if seq_p != seq:                                           # pad seq to chunk mult
        pad = seq_p - seq
        xz = jnp.pad(xz, ((0, pad), (0, 0), (0, 0)))
        t_sm = jnp.pad(t_sm, ((0, pad), (0, 0), (0, 0)))

    kernel = functools.partial(_tlstm_kernel, hidden_dim=H, chunk=chunk)

    # ---- VMEM budget (double-buffered seq blocks + resident weights + scratch).
    f32b = 4
    vmem_est = f32b * (
        2 * chunk * block_b * (4 * H + 1)        # xz + t blocks
        + 2 * 2 * chunk * block_b * H            # hs + cs output blocks
        + 2 * (H * 4 * H + H * H + H)            # U_all, W_d, b_d (conservative)
        + 2 * block_b * H)                       # h / c scratch
    vmem_limit = int(min(max(2 * vmem_est, 32 << 20), 64 << 20))

    grid_spec = pltpu.PrefetchScalarGridSpec(
        num_scalar_prefetch=0,
        grid=(n_bb, n_chunks),
        in_specs=[
            pl.BlockSpec((chunk, block_b, 4 * H), lambda bi, si: (si, bi, 0)),  # xz
            pl.BlockSpec((chunk, block_b, 1),     lambda bi, si: (si, bi, 0)),  # t
            pl.BlockSpec((H, 4 * H), lambda bi, si: (0, 0)),                    # U_all
            pl.BlockSpec((H, H),     lambda bi, si: (0, 0)),                    # W_d
            pl.BlockSpec((1, H),     lambda bi, si: (0, 0)),                    # b_d
        ],
        out_specs=[
            pl.BlockSpec((chunk, block_b, H), lambda bi, si: (si, bi, 0)),      # hs
            pl.BlockSpec((chunk, block_b, H), lambda bi, si: (si, bi, 0)),      # cs
        ],
        scratch_shapes=[
            pltpu.VMEM((block_b, H), jnp.float32),    # h carry
            pltpu.VMEM((block_b, H), jnp.float32),    # c carry
        ],
    )

    hs_sm, cs_sm = pl.pallas_call(
        kernel,
        out_shape=(
            jax.ShapeDtypeStruct((seq_p, b, H), jnp.float32),
            jax.ShapeDtypeStruct((seq_p, b, H), jnp.float32),
        ),
        grid_spec=grid_spec,
        compiler_params=pltpu.CompilerParams(
            # batch blocks are independent (megacore-parallel on v7x);
            # the sequence axis is the recurrence => strictly sequential.
            dimension_semantics=("parallel", "arbitrary"),
            vmem_limit_bytes=vmem_limit),
    )(xz, t_sm, params["ua"], params["wd"], params["bd"])

    hs = jnp.transpose(hs_sm[:seq], (1, 0, 2))     # (B, S, H)
    cs = jnp.transpose(cs_sm[:seq], (1, 0, 2))     # (B, S, H)

    # ---- hoisted output projection: one batched MXU matmul after the recurrence.
    outs = (hs.reshape(-1, H) @ params["wo"] + params["bo"]).reshape(b, seq, O)
    return outs, (hs, cs)


def tlstm_reference(params, inputs, time_diffs):
    """Pure-JAX reference (mirrors the PyTorch forward exactly)."""
    b, seq, d = inputs.shape
    H = params["wd"].shape[0]
    h = jnp.zeros((b, H), jnp.float32)
    c = jnp.zeros((b, H), jnp.float32)
    hs, cs = [], []
    for s in range(seq):
        x = inputs[:, s, :]
        t = time_diffs[:, s][:, None]
        c_st = jax.nn.sigmoid(c @ params["wd"] + params["bd"])
        c_adj = c - c_st + c_st * t
        outs = x @ params["wa"] + params["ba"] + h @ params["ua"] + params["bu"]
        f = jax.nn.sigmoid(outs[:, 0 * H:1 * H])
        i = jax.nn.sigmoid(outs[:, 1 * H:2 * H])
        o = jax.nn.sigmoid(outs[:, 2 * H:3 * H])
        g = jnp.tanh(outs[:, 3 * H:4 * H])
        c = f * c_adj + i * g
        h = o * jnp.tanh(c)
        hs.append(h)
        cs.append(c)
    hs = jnp.stack(hs, 1)
    cs = jnp.stack(cs, 1)
    outputs = (hs.reshape(-1, H) @ params["wo"] + params["bo"]).reshape(b, seq, -1)
    return outputs, (hs, cs)


def init_params(key, input_dim, hidden_dim, output_dim):
    """Deterministic synthetic weights. Stored pre-transposed: y = x @ W + b."""
    ks = jax.random.split(key, 8)

    def lin(kw, kb, fan_in, fan_out):
        bound = 1.0 / jnp.sqrt(fan_in)
        w = jax.random.uniform(kw, (fan_in, fan_out), jnp.float32, -bound, bound)
        bvec = jax.random.uniform(kb, (1, fan_out), jnp.float32, -bound, bound)
        return w, bvec

    wa, ba = lin(ks[0], ks[1], input_dim, 4 * hidden_dim)   # W_all
    ua, bu = lin(ks[2], ks[3], hidden_dim, 4 * hidden_dim)  # U_all
    wd, bd = lin(ks[4], ks[5], hidden_dim, hidden_dim)      # W_d
    wo, bo = lin(ks[6], ks[7], hidden_dim, output_dim)      # output_layer
    return dict(wa=wa, ba=ba, ua=ua, bu=bu, wd=wd, bd=bd, wo=wo, bo=bo)


if __name__ == "__main__":
    B, S, D, H, O = 2, 10, 4, 32, 4
    key = jax.random.PRNGKey(0)
    k_in, k_t, k_p = jax.random.split(key, 3)

    inputs = jax.random.normal(k_in, (B, S, D), jnp.float32)
    time_diffs = jax.random.uniform(k_t, (B, S), jnp.float32, 0.0, 2.0)
    params = init_params(k_p, D, H, O)

    # chunk=4 exercises the multi-chunk carry and sequence padding (10 -> 12).
    outs, (hs, cs) = tlstm_forward(params, inputs, time_diffs, chunk=4)
    outs = jax.block_until_ready(outs)
    hs = jax.block_until_ready(hs)
    cs = jax.block_until_ready(cs)

    outs_ref, (hs_ref, cs_ref) = tlstm_reference(params, inputs, time_diffs)
    assert jnp.allclose(outs, outs_ref, atol=5e-5), "outputs mismatch"
    assert jnp.allclose(hs, hs_ref, atol=5e-5), "hs mismatch"
    assert jnp.allclose(cs, cs_ref, atol=5e-5), "cs mismatch"

    print("KERNEL_OK")
</pallas_src>

<mosaic_0001>
module attributes {stable_mosaic.version = 11 : i64} {
  func.func @_tlstm_kernel(%arg0: i32, %arg1: i32, %arg2: memref<4x2x128xf32, #tpu.memory_space<vmem>>, %arg3: memref<4x2x1xf32, #tpu.memory_space<vmem>>, %arg4: memref<32x128xf32, #tpu.memory_space<vmem>>, %arg5: memref<32x32xf32, #tpu.memory_space<vmem>>, %arg6: memref<1x32xf32, #tpu.memory_space<vmem>>, %arg7: memref<4x2x32xf32, #tpu.memory_space<vmem>>, %arg8: memref<4x2x32xf32, #tpu.memory_space<vmem>>, %arg9: memref<2x32xf32, #tpu.memory_space<vmem>>, %arg10: memref<2x32xf32, #tpu.memory_space<vmem>>) attributes {dimension_semantics = [#tpu.dimension_semantics<parallel>, #tpu.dimension_semantics<arbitrary>], iteration_bounds = array<i64: 1, 3>, scalar_prefetch = 0 : i64, scratch_operands = 2 : i64, tpu.core_type = #tpu.core_type<tc>, window_params = [{transform_indices = @transform_0, window_bounds = array<i64: 4, 2, 128>}, {transform_indices = @transform_1, window_bounds = array<i64: 4, 2, 1>}, {pipeline_mode = #tpu.pipeline_mode<synchronous>, transform_indices = @transform_2, window_bounds = array<i64: 32, 128>}, {pipeline_mode = #tpu.pipeline_mode<synchronous>, transform_indices = @transform_3, window_bounds = array<i64: 32, 32>}, {pipeline_mode = #tpu.pipeline_mode<synchronous>, transform_indices = @transform_4, window_bounds = array<i64: 1, 32>}, {transform_indices = @transform_5, window_bounds = array<i64: 4, 2, 32>}, {transform_indices = @transform_6, window_bounds = array<i64: 4, 2, 32>}]} {
    %c0_i32 = arith.constant 0 : i32
    %0 = arith.cmpi eq, %arg1, %c0_i32 : i32
    %1 = arith.extui %0 : i1 to i32
    %c0_i32_0 = arith.constant 0 : i32
    %2 = arith.cmpi ne, %1, %c0_i32_0 : i32
    scf.if %2 {
      %cst_70 = arith.constant 0.000000e+00 : f32
      %220 = vector.broadcast %cst_70 : f32 to vector<2x32xf32>
      %c0_71 = arith.constant 0 : index
      %c0_72 = arith.constant 0 : index
      %221 = vector.load %arg9[%c0_71, %c0_72] : memref<2x32xf32, #tpu.memory_space<vmem>>, vector<2x32xf32>
      tpu.vector_store %arg9[%c0_71, %c0_72], %220 {strides = array<i32>} : memref<2x32xf32, #tpu.memory_space<vmem>>, vector<2x32xf32>,
      %cst_73 = arith.constant 0.000000e+00 : f32
      %222 = vector.broadcast %cst_73 : f32 to vector<2x32xf32>
      %c0_74 = arith.constant 0 : index
      %c0_75 = arith.constant 0 : index
      %223 = vector.load %arg10[%c0_74, %c0_75] : memref<2x32xf32, #tpu.memory_space<vmem>>, vector<2x32xf32>
      tpu.vector_store %arg10[%c0_74, %c0_75], %222 {strides = array<i32>} : memref<2x32xf32, #tpu.memory_space<vmem>>, vector<2x32xf32>,
    } else {
    }
    %c0 = arith.constant 0 : index
    %c0_1 = arith.constant 0 : index
    %3 = vector.load %arg4[%c0, %c0_1] : memref<32x128xf32, #tpu.memory_space<vmem>>, vector<32x128xf32>
    %c0_2 = arith.constant 0 : index
    %c0_3 = arith.constant 0 : index
    %4 = vector.load %arg5[%c0_2, %c0_3] : memref<32x32xf32, #tpu.memory_space<vmem>>, vector<32x32xf32>
    %c0_4 = arith.constant 0 : index
    %c0_5 = arith.constant 0 : index
    %5 = vector.load %arg6[%c0_4, %c0_5] : memref<1x32xf32, #tpu.memory_space<vmem>>, vector<1x32xf32>
    %6 = vector.shape_cast %5 : vector<1x32xf32> to vector<1x32xf32>
    %7 = vector.broadcast %6 : vector<1x32xf32> to vector<2x32xf32>
    %c0_6 = arith.constant 0 : index
    %c0_7 = arith.constant 0 : index
    %8 = vector.load %arg9[%c0_6, %c0_7] : memref<2x32xf32, #tpu.memory_space<vmem>>, vector<2x32xf32>
    %c0_8 = arith.constant 0 : index
    %c0_9 = arith.constant 0 : index
    %9 = vector.load %arg10[%c0_8, %c0_9] : memref<2x32xf32, #tpu.memory_space<vmem>>, vector<2x32xf32>
    %c0_i32_10 = arith.constant 0 : i32
    %10 = arith.index_cast %c0_i32_10 : i32 to index
    %c0_11 = arith.constant 0 : index
    %c0_12 = arith.constant 0 : index
    %11 = vector.load %arg2[%10, %c0_11, %c0_12] : memref<4x2x128xf32, #tpu.memory_space<vmem>>, vector<1x2x128xf32>
    %12 = vector.shape_cast %11 : vector<1x2x128xf32> to vector<2x128xf32>
    %13 = arith.index_cast %c0_i32_10 : i32 to index
    %c0_13 = arith.constant 0 : index
    %c0_14 = arith.constant 0 : index
    %14 = vector.load %arg3[%13, %c0_13, %c0_14] : memref<4x2x1xf32, #tpu.memory_space<vmem>>, vector<1x2x1xf32>
    %15 = vector.shape_cast %14 : vector<1x2x1xf32> to vector<2x1xf32>
    %cst = arith.constant dense<0.000000e+00> : vector<2x32xf32>
    %16 = tpu.matmul %9, %4, %cst {dimension_numbers = #tpu.dot_dimension_numbers<[1], [0], [0], [1], [0, 0, 1, 1], [], []>} : vector<2x32xf32>, vector<32x32xf32>, vector<2x32xf32> -> vector<2x32xf32>
    %17 = arith.addf %16, %7 : vector<2x32xf32>
    %18 = arith.negf %17 : vector<2x32xf32>
    %19 = math.exp %18 : vector<2x32xf32>
    %cst_15 = arith.constant 1.000000e+00 : f32
    %20 = vector.broadcast %cst_15 : f32 to vector<2x32xf32>
    %21 = arith.addf %20, %19 : vector<2x32xf32>
    %22 = arith.divf %20, %21 : vector<2x32xf32>
    %23 = arith.subf %9, %22 : vector<2x32xf32>
    %24 = vector.broadcast %15 : vector<2x1xf32> to vector<2x32xf32>
    %25 = arith.mulf %22, %24 : vector<2x32xf32>
    %26 = arith.addf %23, %25 : vector<2x32xf32>
    %cst_16 = arith.constant dense<0.000000e+00> : vector<2x128xf32>
    %27 = tpu.matmul %8, %3, %cst_16 {dimension_numbers = #tpu.dot_dimension_numbers<[1], [0], [0], [1], [0, 0, 1, 1], [], []>} : vector<2x32xf32>, vector<32x128xf32>, vector<2x128xf32> -> vector<2x128xf32>
    %28 = arith.addf %12, %27 : vector<2x128xf32>
    %29 = vector.extract_strided_slice %28 {offsets = [0, 0], sizes = [2, 32], strides = [1, 1]} : vector<2x128xf32> to vector<2x32xf32>
    %30 = arith.negf %29 : vector<2x32xf32>
    %31 = math.exp %30 : vector<2x32xf32>
    %cst_17 = arith.constant 1.000000e+00 : f32
    %32 = vector.broadcast %cst_17 : f32 to vector<2x32xf32>
    %33 = arith.addf %32, %31 : vector<2x32xf32>
    %34 = arith.divf %32, %33 : vector<2x32xf32>
    %35 = vector.extract_strided_slice %28 {offsets = [0, 32], sizes = [2, 32], strides = [1, 1]} : vector<2x128xf32> to vector<2x32xf32>
    %36 = arith.negf %35 : vector<2x32xf32>
    %37 = math.exp %36 : vector<2x32xf32>
    %cst_18 = arith.constant 1.000000e+00 : f32
    %38 = vector.broadcast %cst_18 : f32 to vector<2x32xf32>
    %39 = arith.addf %38, %37 : vector<2x32xf32>
    %40 = arith.divf %38, %39 : vector<2x32xf32>
    %41 = vector.extract_strided_slice %28 {offsets = [0, 64], sizes = [2, 32], strides = [1, 1]} : vector<2x128xf32> to vector<2x32xf32>
    %42 = arith.negf %41 : vector<2x32xf32>
    %43 = math.exp %42 : vector<2x32xf32>
    %cst_19 = arith.constant 1.000000e+00 : f32
    %44 = vector.broadcast %cst_19 : f32 to vector<2x32xf32>
    %45 = arith.addf %44, %43 : vector<2x32xf32>
    %46 = arith.divf %44, %45 : vector<2x32xf32>
    %47 = vector.extract_strided_slice %28 {offsets = [0, 96], sizes = [2, 32], strides = [1, 1]} : vector<2x128xf32> to vector<2x32xf32>
    %48 = math.tanh %47 : vector<2x32xf32>
    %49 = arith.mulf %34, %26 : vector<2x32xf32>
    %50 = arith.mulf %40, %48 : vector<2x32xf32>
    %51 = arith.addf %49, %50 : vector<2x32xf32>
    %52 = math.tanh %51 : vector<2x32xf32>
    %53 = arith.mulf %46, %52 : vector<2x32xf32>
    %54 = arith.index_cast %c0_i32_10 : i32 to index
    %c0_20 = arith.constant 0 : index
    %c0_21 = arith.constant 0 : index
    %55 = vector.load %arg7[%54, %c0_20, %c0_21] : memref<4x2x32xf32, #tpu.memory_space<vmem>>, vector<1x2x32xf32>
    %56 = vector.shape_cast %55 : vector<1x2x32xf32> to vector<2x32xf32>
    %57 = vector.shape_cast %53 : vector<2x32xf32> to vector<1x2x32xf32>
    tpu.vector_store %arg7[%54, %c0_20, %c0_21], %57 {strides = array<i32>} : memref<4x2x32xf32, #tpu.memory_space<vmem>>, vector<1x2x32xf32>,
    %58 = arith.index_cast %c0_i32_10 : i32 to index
    %c0_22 = arith.constant 0 : index
    %c0_23 = arith.constant 0 : index
    %59 = vector.load %arg8[%58, %c0_22, %c0_23] : memref<4x2x32xf32, #tpu.memory_space<vmem>>, vector<1x2x32xf32>
    %60 = vector.shape_cast %59 : vector<1x2x32xf32> to vector<2x32xf32>
    %61 = vector.shape_cast %51 : vector<2x32xf32> to vector<1x2x32xf32>
    tpu.vector_store %arg8[%58, %c0_22, %c0_23], %61 {strides = array<i32>} : memref<4x2x32xf32, #tpu.memory_space<vmem>>, vector<1x2x32xf32>,
    %c1_i32 = arith.constant 1 : i32
    %62 = arith.index_cast %c1_i32 : i32 to index
    %c0_24 = arith.constant 0 : index
    %c0_25 = arith.constant 0 : index
    %63 = vector.load %arg2[%62, %c0_24, %c0_25] : memref<4x2x128xf32, #tpu.memory_space<vmem>>, vector<1x2x128xf32>
    %64 = vector.shape_cast %63 : vector<1x2x128xf32> to vector<2x128xf32>
    %65 = arith.index_cast %c1_i32 : i32 to index
    %c0_26 = arith.constant 0 : index
    %c0_27 = arith.constant 0 : index
    %66 = vector.load %arg3[%65, %c0_26, %c0_27] : memref<4x2x1xf32, #tpu.memory_space<vmem>>, vector<1x2x1xf32>
    %67 = vector.shape_cast %66 : vector<1x2x1xf32> to vector<2x1xf32>
    %cst_28 = arith.constant dense<0.000000e+00> : vector<2x32xf32>
    %68 = tpu.matmul %51, %4, %cst_28 {dimension_numbers = #tpu.dot_dimension_numbers<[1], [0], [0], [1], [0, 0, 1, 1], [], []>} : vector<2x32xf32>, vector<32x32xf32>, vector<2x32xf32> -> vector<2x32xf32>
    %69 = arith.addf %68, %7 : vector<2x32xf32>
    %70 = arith.negf %69 : vector<2x32xf32>
    %71 = math.exp %70 : vector<2x32xf32>
    %cst_29 = arith.constant 1.000000e+00 : f32
    %72 = vector.broadcast %cst_29 : f32 to vector<2x32xf32>
    %73 = arith.addf %72, %71 : vector<2x32xf32>
    %74 = arith.divf %72, %73 : vector<2x32xf32>
    %75 = arith.subf %51, %74 : vector<2x32xf32>
    %76 = vector.broadcast %67 : vector<2x1xf32> to vector<2x32xf32>
    %77 = arith.mulf %74, %76 : vector<2x32xf32>
    %78 = arith.addf %75, %77 : vector<2x32xf32>
    %cst_30 = arith.constant dense<0.000000e+00> : vector<2x128xf32>
    %79 = tpu.matmul %53, %3, %cst_30 {dimension_numbers = #tpu.dot_dimension_numbers<[1], [0], [0], [1], [0, 0, 1, 1], [], []>} : vector<2x32xf32>, vector<32x128xf32>, vector<2x128xf32> -> vector<2x128xf32>
    %80 = arith.addf %64, %79 : vector<2x128xf32>
    %81 = vector.extract_strided_slice %80 {offsets = [0, 0], sizes = [2, 32], strides = [1, 1]} : vector<2x128xf32> to vector<2x32xf32>
    %82 = arith.negf %81 : vector<2x32xf32>
    %83 = math.exp %82 : vector<2x32xf32>
    %cst_31 = arith.constant 1.000000e+00 : f32
    %84 = vector.broadcast %cst_31 : f32 to vector<2x32xf32>
    %85 = arith.addf %84, %83 : vector<2x32xf32>
    %86 = arith.divf %84, %85 : vector<2x32xf32>
    %87 = vector.extract_strided_slice %80 {offsets = [0, 32], sizes = [2, 32], strides = [1, 1]} : vector<2x128xf32> to vector<2x32xf32>
    %88 = arith.negf %87 : vector<2x32xf32>
    %89 = math.exp %88 : vector<2x32xf32>
    %cst_32 = arith.constant 1.000000e+00 : f32
    %90 = vector.broadcast %cst_32 : f32 to vector<2x32xf32>
    %91 = arith.addf %90, %89 : vector<2x32xf32>
    %92 = arith.divf %90, %91 : vector<2x32xf32>
    %93 = vector.extract_strided_slice %80 {offsets = [0, 64], sizes = [2, 32], strides = [1, 1]} : vector<2x128xf32> to vector<2x32xf32>
    %94 = arith.negf %93 : vector<2x32xf32>
    %95 = math.exp %94 : vector<2x32xf32>
    %cst_33 = arith.constant 1.000000e+00 : f32
    %96 = vector.broadcast %cst_33 : f32 to vector<2x32xf32>
    %97 = arith.addf %96, %95 : vector<2x32xf32>
    %98 = arith.divf %96, %97 : vector<2x32xf32>
    %99 = vector.extract_strided_slice %80 {offsets = [0, 96], sizes = [2, 32], strides = [1, 1]} : vector<2x128xf32> to vector<2x32xf32>
    %100 = math.tanh %99 : vector<2x32xf32>
    %101 = arith.mulf %86, %78 : vector<2x32xf32>
    %102 = arith.mulf %92, %100 : vector<2x32xf32>
    %103 = arith.addf %101, %102 : vector<2x32xf32>
    %104 = math.tanh %103 : vector<2x32xf32>
    %105 = arith.mulf %98, %104 : vector<2x32xf32>
    %106 = arith.index_cast %c1_i32 : i32 to index
    %c0_34 = arith.constant 0 : index
    %c0_35 = arith.constant 0 : index
    %107 = vector.load %arg7[%106, %c0_34, %c0_35] : memref<4x2x32xf32, #tpu.memory_space<vmem>>, vector<1x2x32xf32>
    %108 = vector.shape_cast %107 : vector<1x2x32xf32> to vector<2x32xf32>
    %109 = vector.shape_cast %105 : vector<2x32xf32> to vector<1x2x32xf32>
    tpu.vector_store %arg7[%106, %c0_34, %c0_35], %109 {strides = array<i32>} : memref<4x2x32xf32, #tpu.memory_space<vmem>>, vector<1x2x32xf32>,
    %110 = arith.index_cast %c1_i32 : i32 to index
    %c0_36 = arith.constant 0 : index
    %c0_37 = arith.constant 0 : index
    %111 = vector.load %arg8[%110, %c0_36, %c0_37] : memref<4x2x32xf32, #tpu.memory_space<vmem>>, vector<1x2x32xf32>
    %112 = vector.shape_cast %111 : vector<1x2x32xf32> to vector<2x32xf32>
    %113 = vector.shape_cast %103 : vector<2x32xf32> to vector<1x2x32xf32>
    tpu.vector_store %arg8[%110, %c0_36, %c0_37], %113 {strides = array<i32>} : memref<4x2x32xf32, #tpu.memory_space<vmem>>, vector<1x2x32xf32>,
    %c2_i32 = arith.constant 2 : i32
    %114 = arith.index_cast %c2_i32 : i32 to index
    %c0_38 = arith.constant 0 : index
    %c0_39 = arith.constant 0 : index
    %115 = vector.load %arg2[%114, %c0_38, %c0_39] : memref<4x2x128xf32, #tpu.memory_space<vmem>>, vector<1x2x128xf32>
    %116 = vector.shape_cast %115 : vector<1x2x128xf32> to vector<2x128xf32>
    %117 = arith.index_cast %c2_i32 : i32 to index
    %c0_40 = arith.constant 0 : index
    %c0_41 = arith.constant 0 : index
    %118 = vector.load %arg3[%117, %c0_40, %c0_41] : memref<4x2x1xf32, #tpu.memory_space<vmem>>, vector<1x2x1xf32>
    %119 = vector.shape_cast %118 : vector<1x2x1xf32> to vector<2x1xf32>
    %cst_42 = arith.constant dense<0.000000e+00> : vector<2x32xf32>
    %120 = tpu.matmul %103, %4, %cst_42 {dimension_numbers = #tpu.dot_dimension_numbers<[1], [0], [0], [1], [0, 0, 1, 1], [], []>} : vector<2x32xf32>, vector<32x32xf32>, vector<2x32xf32> -> vector<2x32xf32>
    %121 = arith.addf %120, %7 : vector<2x32xf32>
    %122 = arith.negf %121 : vector<2x32xf32>
    %123 = math.exp %122 : vector<2x32xf32>
    %cst_43 = arith.constant 1.000000e+00 : f32
    %124 = vector.broadcast %cst_43 : f32 to vector<2x32xf32>
    %125 = arith.addf %124, %123 : vector<2x32xf32>
    %126 = arith.divf %124, %125 : vector<2x32xf32>
    %127 = arith.subf %103, %126 : vector<2x32xf32>
    %128 = vector.broadcast %119 : vector<2x1xf32> to vector<2x32xf32>
    %129 = arith.mulf %126, %128 : vector<2x32xf32>
    %130 = arith.addf %127, %129 : vector<2x32xf32>
    %cst_44 = arith.constant dense<0.000000e+00> : vector<2x128xf32>
    %131 = tpu.matmul %105, %3, %cst_44 {dimension_numbers = #tpu.dot_dimension_numbers<[1], [0], [0], [1], [0, 0, 1, 1], [], []>} : vector<2x32xf32>, vector<32x128xf32>, vector<2x128xf32> -> vector<2x128xf32>
    %132 = arith.addf %116, %131 : vector<2x128xf32>
    %133 = vector.extract_strided_slice %132 {offsets = [0, 0], sizes = [2, 32], strides = [1, 1]} : vector<2x128xf32> to vector<2x32xf32>
    %134 = arith.negf %133 : vector<2x32xf32>
    %135 = math.exp %134 : vector<2x32xf32>
    %cst_45 = arith.constant 1.000000e+00 : f32
    %136 = vector.broadcast %cst_45 : f32 to vector<2x32xf32>
    %137 = arith.addf %136, %135 : vector<2x32xf32>
    %138 = arith.divf %136, %137 : vector<2x32xf32>
    %139 = vector.extract_strided_slice %132 {offsets = [0, 32], sizes = [2, 32], strides = [1, 1]} : vector<2x128xf32> to vector<2x32xf32>
    %140 = arith.negf %139 : vector<2x32xf32>
    %141 = math.exp %140 : vector<2x32xf32>
    %cst_46 = arith.constant 1.000000e+00 : f32
    %142 = vector.broadcast %cst_46 : f32 to vector<2x32xf32>
    %143 = arith.addf %142, %141 : vector<2x32xf32>
    %144 = arith.divf %142, %143 : vector<2x32xf32>
    %145 = vector.extract_strided_slice %132 {offsets = [0, 64], sizes = [2, 32], strides = [1, 1]} : vector<2x128xf32> to vector<2x32xf32>
    %146 = arith.negf %145 : vector<2x32xf32>
    %147 = math.exp %146 : vector<2x32xf32>
    %cst_47 = arith.constant 1.000000e+00 : f32
    %148 = vector.broadcast %cst_47 : f32 to vector<2x32xf32>
    %149 = arith.addf %148, %147 : vector<2x32xf32>
    %150 = arith.divf %148, %149 : vector<2x32xf32>
    %151 = vector.extract_strided_slice %132 {offsets = [0, 96], sizes = [2, 32], strides = [1, 1]} : vector<2x128xf32> to vector<2x32xf32>
    %152 = math.tanh %151 : vector<2x32xf32>
    %153 = arith.mulf %138, %130 : vector<2x32xf32>
    %154 = arith.mulf %144, %152 : vector<2x32xf32>
    %155 = arith.addf %153, %154 : vector<2x32xf32>
    %156 = math.tanh %155 : vector<2x32xf32>
    %157 = arith.mulf %150, %156 : vector<2x32xf32>
    %158 = arith.index_cast %c2_i32 : i32 to index
    %c0_48 = arith.constant 0 : index
    %c0_49 = arith.constant 0 : index
    %159 = vector.load %arg7[%158, %c0_48, %c0_49] : memref<4x2x32xf32, #tpu.memory_space<vmem>>, vector<1x2x32xf32>
    %160 = vector.shape_cast %159 : vector<1x2x32xf32> to vector<2x32xf32>
    %161 = vector.shape_cast %157 : vector<2x32xf32> to vector<1x2x32xf32>
    tpu.vector_store %arg7[%158, %c0_48, %c0_49], %161 {strides = array<i32>} : memref<4x2x32xf32, #tpu.memory_space<vmem>>, vector<1x2x32xf32>,
    %162 = arith.index_cast %c2_i32 : i32 to index
    %c0_50 = arith.constant 0 : index
    %c0_51 = arith.constant 0 : index
    %163 = vector.load %arg8[%162, %c0_50, %c0_51] : memref<4x2x32xf32, #tpu.memory_space<vmem>>, vector<1x2x32xf32>
    %164 = vector.shape_cast %163 : vector<1x2x32xf32> to vector<2x32xf32>
    %165 = vector.shape_cast %155 : vector<2x32xf32> to vector<1x2x32xf32>
    tpu.vector_store %arg8[%162, %c0_50, %c0_51], %165 {strides = array<i32>} : memref<4x2x32xf32, #tpu.memory_space<vmem>>, vector<1x2x32xf32>,
    %c3_i32 = arith.constant 3 : i32
    %166 = arith.index_cast %c3_i32 : i32 to index
    %c0_52 = arith.constant 0 : index
    %c0_53 = arith.constant 0 : index
    %167 = vector.load %arg2[%166, %c0_52, %c0_53] : memref<4x2x128xf32, #tpu.memory_space<vmem>>, vector<1x2x128xf32>
    %168 = vector.shape_cast %167 : vector<1x2x128xf32> to vector<2x128xf32>
    %169 = arith.index_cast %c3_i32 : i32 to index
    %c0_54 = arith.constant 0 : index
    %c0_55 = arith.constant 0 : index
    %170 = vector.load %arg3[%169, %c0_54, %c0_55] : memref<4x2x1xf32, #tpu.memory_space<vmem>>, vector<1x2x1xf32>
    %171 = vector.shape_cast %170 : vector<1x2x1xf32> to vector<2x1xf32>
    %cst_56 = arith.constant dense<0.000000e+00> : vector<2x32xf32>
    %172 = tpu.matmul %155, %4, %cst_56 {dimension_numbers = #tpu.dot_dimension_numbers<[1], [0], [0], [1], [0, 0, 1, 1], [], []>} : vector<2x32xf32>, vector<32x32xf32>, vector<2x32xf32> -> vector<2x32xf32>
    %173 = arith.addf %172, %7 : vector<2x32xf32>
    %174 = arith.negf %173 : vector<2x32xf32>
    %175 = math.exp %174 : vector<2x32xf32>
    %cst_57 = arith.constant 1.000000e+00 : f32
    %176 = vector.broadcast %cst_57 : f32 to vector<2x32xf32>
    %177 = arith.addf %176, %175 : vector<2x32xf32>
    %178 = arith.divf %176, %177 : vector<2x32xf32>
    %179 = arith.subf %155, %178 : vector<2x32xf32>
    %180 = vector.broadcast %171 : vector<2x1xf32> to vector<2x32xf32>
    %181 = arith.mulf %178, %180 : vector<2x32xf32>
    %182 = arith.addf %179, %181 : vector<2x32xf32>
    %cst_58 = arith.constant dense<0.000000e+00> : vector<2x128xf32>
    %183 = tpu.matmul %157, %3, %cst_58 {dimension_numbers = #tpu.dot_dimension_numbers<[1], [0], [0], [1], [0, 0, 1, 1], [], []>} : vector<2x32xf32>, vector<32x128xf32>, vector<2x128xf32> -> vector<2x128xf32>
    %184 = arith.addf %168, %183 : vector<2x128xf32>
    %185 = vector.extract_strided_slice %184 {offsets = [0, 0], sizes = [2, 32], strides = [1, 1]} : vector<2x128xf32> to vector<2x32xf32>
    %186 = arith.negf %185 : vector<2x32xf32>
    %187 = math.exp %186 : vector<2x32xf32>
    %cst_59 = arith.constant 1.000000e+00 : f32
    %188 = vector.broadcast %cst_59 : f32 to vector<2x32xf32>
    %189 = arith.addf %188, %187 : vector<2x32xf32>
    %190 = arith.divf %188, %189 : vector<2x32xf32>
    %191 = vector.extract_strided_slice %184 {offsets = [0, 32], sizes = [2, 32], strides = [1, 1]} : vector<2x128xf32> to vector<2x32xf32>
    %192 = arith.negf %191 : vector<2x32xf32>
    %193 = math.exp %192 : vector<2x32xf32>
    %cst_60 = arith.constant 1.000000e+00 : f32
    %194 = vector.broadcast %cst_60 : f32 to vector<2x32xf32>
    %195 = arith.addf %194, %193 : vector<2x32xf32>
    %196 = arith.divf %194, %195 : vector<2x32xf32>
    %197 = vector.extract_strided_slice %184 {offsets = [0, 64], sizes = [2, 32], strides = [1, 1]} : vector<2x128xf32> to vector<2x32xf32>
    %198 = arith.negf %197 : vector<2x32xf32>
    %199 = math.exp %198 : vector<2x32xf32>
    %cst_61 = arith.constant 1.000000e+00 : f32
    %200 = vector.broadcast %cst_61 : f32 to vector<2x32xf32>
    %201 = arith.addf %200, %199 : vector<2x32xf32>
    %202 = arith.divf %200, %201 : vector<2x32xf32>
    %203 = vector.extract_strided_slice %184 {offsets = [0, 96], sizes = [2, 32], strides = [1, 1]} : vector<2x128xf32> to vector<2x32xf32>
    %204 = math.tanh %203 : vector<2x32xf32>
    %205 = arith.mulf %190, %182 : vector<2x32xf32>
    %206 = arith.mulf %196, %204 : vector<2x32xf32>
    %207 = arith.addf %205, %206 : vector<2x32xf32>
    %208 = math.tanh %207 : vector<2x32xf32>
    %209 = arith.mulf %202, %208 : vector<2x32xf32>
    %210 = arith.index_cast %c3_i32 : i32 to index
    %c0_62 = arith.constant 0 : index
    %c0_63 = arith.constant 0 : index
    %211 = vector.load %arg7[%210, %c0_62, %c0_63] : memref<4x2x32xf32, #tpu.memory_space<vmem>>, vector<1x2x32xf32>
    %212 = vector.shape_cast %211 : vector<1x2x32xf32> to vector<2x32xf32>
    %213 = vector.shape_cast %209 : vector<2x32xf32> to vector<1x2x32xf32>
    tpu.vector_store %arg7[%210, %c0_62, %c0_63], %213 {strides = array<i32>} : memref<4x2x32xf32, #tpu.memory_space<vmem>>, vector<1x2x32xf32>,
    %214 = arith.index_cast %c3_i32 : i32 to index
    %c0_64 = arith.constant 0 : index
    %c0_65 = arith.constant 0 : index
    %215 = vector.load %arg8[%214, %c0_64, %c0_65] : memref<4x2x32xf32, #tpu.memory_space<vmem>>, vector<1x2x32xf32>
    %216 = vector.shape_cast %215 : vector<1x2x32xf32> to vector<2x32xf32>
    %217 = vector.shape_cast %207 : vector<2x32xf32> to vector<1x2x32xf32>
    tpu.vector_store %arg8[%214, %c0_64, %c0_65], %217 {strides = array<i32>} : memref<4x2x32xf32, #tpu.memory_space<vmem>>, vector<1x2x32xf32>,
    %c4_i32 = arith.constant 4 : i32
    %c0_66 = arith.constant 0 : index
    %c0_67 = arith.constant 0 : index
    %218 = vector.load %arg9[%c0_66, %c0_67] : memref<2x32xf32, #tpu.memory_space<vmem>>, vector<2x32xf32>
    tpu.vector_store %arg9[%c0_66, %c0_67], %209 {strides = array<i32>} : memref<2x32xf32, #tpu.memory_space<vmem>>, vector<2x32xf32>,
    %c0_68 = arith.constant 0 : index
    %c0_69 = arith.constant 0 : index
    %219 = vector.load %arg10[%c0_68, %c0_69] : memref<2x32xf32, #tpu.memory_space<vmem>>, vector<2x32xf32>
    tpu.vector_store %arg10[%c0_68, %c0_69], %207 {strides = array<i32>} : memref<2x32xf32, #tpu.memory_space<vmem>>, vector<2x32xf32>,
    return
  }
  func.func @transform_0(%arg0: i32, %arg1: i32) -> (i32, i32, i32) {
    %c0_i32 = arith.constant 0 : i32
    %c0_i32_0 = arith.constant 0 : i32
    return %arg1, %arg0, %c0_i32 : i32, i32, i32
  }
  func.func @transform_1(%arg0: i32, %arg1: i32) -> (i32, i32, i32) {
    %c0_i32 = arith.constant 0 : i32
    %c0_i32_0 = arith.constant 0 : i32
    return %arg1, %arg0, %c0_i32 : i32, i32, i32
  }
  func.func @transform_2(%arg0: i32, %arg1: i32) -> (i32, i32) {
    %c0_i32 = arith.constant 0 : i32
    %c0_i32_0 = arith.constant 0 : i32
    %c0_i32_1 = arith.constant 0 : i32
    return %c0_i32, %c0_i32_0 : i32, i32
  }
  func.func @transform_3(%arg0: i32, %arg1: i32) -> (i32, i32) {
    %c0_i32 = arith.constant 0 : i32
    %c0_i32_0 = arith.constant 0 : i32
    %c0_i32_1 = arith.constant 0 : i32
    return %c0_i32, %c0_i32_0 : i32, i32
  }
  func.func @transform_4(%arg0: i32, %arg1: i32) -> (i32, i32) {
    %c0_i32 = arith.constant 0 : i32
    %c0_i32_0 = arith.constant 0 : i32
    %c0_i32_1 = arith.constant 0 : i32
    return %c0_i32, %c0_i32_0 : i32, i32
  }
  func.func @transform_5(%arg0: i32, %arg1: i32) -> (i32, i32, i32) {
    %c0_i32 = arith.constant 0 : i32
    %c0_i32_0 = arith.constant 0 : i32
    return %arg1, %arg0, %c0_i32 : i32, i32, i32
  }
  func.func @transform_6(%arg0: i32, %arg1: i32) -> (i32, i32, i32) {
    %c0_i32 = arith.constant 0 : i32
    %c0_i32_0 = arith.constant 0 : i32
    return %arg1, %arg0, %c0_i32 : i32, i32, i32
  }
}

</mosaic_0001>

<bundles_post_ra>
// kernel: tpu_custom_call.1
= control target key start
LH: loop header
LB: loop body
LE: loop exit
PB: predicated region body
PF: predicated region fallthrough
CT: control target
= control target key end

     0   :  { %12 = vsyncpa [#allocation5], 0  ;;  %s2255_s0 = inlined_call_operand.vmem [shape: f32[12,2,128], index: 0, kind: input, shape index: {}]   ;;  %s2256_s1 = inlined_call_operand.vmem [shape: f32[12,2,1], index: 1, kind: input, shape index: {}]   ;;  %s2257_s2 = inlined_call_operand.hbm [shape: f32[32,128], index: 2, kind: input, shape index: {}]   ;;  %s2258_s3 = inlined_call_operand.hbm [shape: f32[32,32], index: 3, kind: input, shape index: {}]   ;;  %s2259_s4 = inlined_call_operand.vmem [shape: f32[1,32], index: 4, kind: input, shape index: {}]   ;;  %s2260_s5 = inlined_call_operand.hbm [shape: f32[12,2,32], index: 5, kind: output, shape index: {0}]   ;;  %s2261_s6 = inlined_call_operand.hbm [shape: f32[12,2,32], index: 6, kind: output, shape index: {1}]  }
   0x1   :  { %13 = vsyncpa [#allocation8], 0 }
   0x2   :  { %14 = vsyncpa [#allocation6], 0 }
   0x3   :  { %16 = vsyncpa [#allocation6 + $0x1], 0 }
   0x4   :  { %17 = vsyncpa [#allocation11], 0 }
   0x5   :  { %19 = vsyncpa [#allocation11 + $0x1], 0  ;;  %s1888_s21 = smov 0   ;;  %s1890_s22 = smov 0  }
   0x6   :  { %s1892_s23 = smov 0   ;;  %s1894_s24 = smov 0  }
   0x7   :  { %s1896_s25 = smov 0   ;;  %s1898_s26 = smov 0  }
   0x8 LB: > { %s1347_s27 = sadd.s32 4294967295, %s1837_s26   ;;  %s1348_s28 = sadd.s32 4294967294, %s1837_s26   ;;  %s1837_s26 = sphi %s1898_s26, %s25_s26   ;;  %s1833_s25 = sphi %s1896_s25, %s2278_s25   ;;  %s1829_s24 = sphi %s1894_s24, %s2277_s24   ;;  %s1825_s23 = sphi %s1892_s23, %s2276_s23   ;;  %s1821_s22 = sphi %s1890_s22, %s2275_s22   ;;  %s1817_s21 = sphi %s1888_s21, %s2274_s21  }
   0x9   : > { %s34_s29 = sadd.s32 1, %s1833_s25  ;;  %s165_s30 = sadd.s32 1, %s1825_s23 }
   0xa   : > { %p35_p0 = scmp.ge.s32.totalorder %s34_s29, 3  ;;  %p175_p1 = scmp.ne.s32.totalorder %s1825_s23, %s1821_s22 }
   0xb   : > { %p176_p2 = scmp.eq.s32.totalorder %s1347_s27, 2  ;;  %p181_p3 = scmp.ne.s32.totalorder %s1821_s22, %s1817_s21 }
   0xc   : > { %s2280_s29 = smov (%p35_p0, %s34_s29), 0  ;;  %p182_p5 = scmp.eq.s32.totalorder %s1348_s28, 2 }
   0xd   : > { %p1928_p4 = por %p176_p2, %p175_p1  ;;  %s160_s8 = ssub.s32 %s1833_s25, %s2280_s29 }
   0xe   : > { %p1349_p6 = scmp.ge.s32.totalorder %s1837_s26, 1  ;;  %p163_p7 = scmp.eq.s32.totalorder %s160_s8, 0 }
   0xf   : > { %s2265_s7 = scalar_select %p1928_p4, 1, 0 }
  0x10   : > { %p1935_p8 = por %p182_p5, %p181_p3  ;;  %p217_p9 = scmp.lt.s32.totalorder %s1837_s26, 4 }
  0x11   : > { %s1941_s10 = scalar_select %p163_p7, %s1825_s23, %s165_s30  }
  0x12   : > { %s2266_s9 = scalar_select %p1935_p8, 1, 0 }
  0x13   : > { %p1943_p10 = pnand %p1349_p6, %p217_p9  ;;  %p1947_p11 = scmp.eq.s32.totalorder %s1347_s27, 0 }
  0x14   : > { %s1839_s13 = smov [#allocation4]   ;;  %s1840_s16 = smov [#allocation7]  }
  0x15   : > { %p1542_p12 = pneg %p1943_p10  ;;  %s229_s14 = sshll.u32 %s1839_s13, 4  ;;  %s230_s14 = int_to_ptr.vmem [resolvable:$true] %s229_s14 }
  0x16   : > { %s242_s17 = sshll.u32 %s1840_s16, 4  ;;  %s1682_s18 = scalar_lea.vmem %s230_s14, 512  ;;  %s243_s17 = int_to_ptr.vmem [resolvable:$true] %s242_s17 }
  0x17   : > { %p1955_p13 = pnand %p1947_p11, %p1542_p12  ;;  %p1683_p1 = scmp.ne.s32.totalorder %s230_s14, %s1682_s18 }
  0x18   : > { %p1690_p5 = scmp.lt.s32.totalorder %s230_s14, %s230_s14  ;;  %p1691_p6 = scmp.lt.s32.totalorder %s1682_s18, %s1682_s18 }
  0x19   : > { %p1673_p0 = pneg %p1955_p13 }
  0x1a   : > { %p1692_p7 = por %p1691_p6, %p1690_p5 }
  0x1b   : > { %p1685_p2 = pnand %p1683_p1, %p1673_p0 }
  0x1d   : > { %p1686_p3 = pneg %p1685_p2 }
  0x1f   : > { %p1693_p9 = pnand %p1692_p7, %p1686_p3 }
  0x21   : > { %1696 = shalt.err (!%p1693_p9)
}
  0x22   : > { %s1841_s19 = smov 128   ;;  %s1842_s20 = smov 8  }
  0x23   : > { %1545 = dma.hbm_to_vmem [thread:$0]  (!%p1955_p13), %s2257_s2, 512, %s230_s14, [#allocation5], %s1841_s19, %s1841_s19, %s1842_s20  }
  0x24   : > { %s1708_s30 = scalar_lea.vmem %s243_s17, 512  ;;  %p1716_p8 = scmp.lt.s32.totalorder %s243_s17, %s243_s17 }
  0x25   : > { %p1709_p12 = scmp.ne.s32.totalorder %s243_s17, %s1708_s30  ;;  %p1717_p4 = scmp.lt.s32.totalorder %s1708_s30, %s1708_s30 }
  0x27   : > { %p1711_p1 = pnand %p1709_p12, %p1673_p0  ;;  %p1718_p5 = por %p1717_p4, %p1716_p8 }
  0x29   : > { %p1712_p2 = pneg %p1711_p1 }
  0x2b   : > { %p1719_p3 = pnand %p1718_p5, %p1712_p2 }
  0x2d   : > { %1722 = shalt.err (!%p1719_p3)
}
  0x2e   : > { %1548 = dma.hbm_to_vmem [thread:$0]  (!%p1955_p13), %s2258_s3, 512, %s243_s17, [#allocation8], %s1841_s19, %s1841_s19, %s1842_s20  }
  0x2f   : > { %285 = sbr.rel (%p1943_p10) target bundleno = 2846 (0xb1e), region = 40 }
  0x34   : > { %1800 = dma.done.wait (%p1947_p11), [#allocation5], 512  }
  0x35   : > { %1802 = vsyncadd (%p1947_p11), [#allocation5], 4294966784 }
  0x36   : > { %1804 = dma.done.wait (%p1947_p11), [#allocation8], 512  }
  0x37   : > { %1806 = vsyncadd (%p1947_p11), [#allocation8], 4294966784  ;;  %s1988_s14 = sand.u32 1, %s1821_s22   ;;  %s1358_s15 = sshll.u32 %s1829_s24, 2 }
  0x38   : > { %s1356_s11 = sshll.u32 %s1988_s14, 3  ;;  %p336_p4 = scmp.lt.s32.totalorder %s1358_s15, 11 }
  0x39   : > { %s2002_s28 = scalar_lea.vmem [#allocation9], %s1356_s11  ;;  %s2004_s30 = scalar_lea.vmem [#allocation10], %s1356_s11 }
  0x3a   : > { %s2282_s15 = smov (!%p336_p4, %s1358_s15), 11  ;;  %p1362_p8 = scmp.ne.s32.totalorder %s1829_s24, 0 }
  0x3b   : > { %s1359_s16 = sshll.u32 %s2282_s15, 1 }
  0x3c   : > { %s1995_s19 = scalar_lea.vmem %s2255_s0, %s1359_s16  ;;  %s2000_s12 = scalar_lea.vmem %s2256_s1, %s1359_s16 }
  0x3d   : > { %358 = sbr.rel (%p1362_p8) target bundleno = 68 (0x44), region = 52 }
  0x42   : > { %vm359_vm0 = vcmask 254976   ;;  %v1843_v0 = vmov 0.0  }
  0x43   : > { %360 = vst.msk [vmem:[#allocation2] sm:$0x3] %vm359_vm0, %v1843_v0  ;;  %361 = vst.msk [vmem:[#allocation3] sm:$0x3] %vm359_vm0, %v1843_v0 }
  0x44 PF: > { %v2007_v1 = vld [vmem:[#allocation4 + $0x18] sm:$0xff]  ;;  %v1844_v2 = vmov 0.0   ;;  %v2010_v3 = vld [vmem:[#allocation4 + $0x10] sm:$0xff]  ;;  %vm1845_vm1 = vmmov 0   ;;  %v2021_v6 = vld [vmem:[#allocation4 + $0x8] sm:$0xff]  ;;  %vm381_vm2 = vcmask 261120  }
  0x45   : > { %1453 = vmatprep.subr.mxu1 %v1844_v2  ;;  %1461 = vmatprep.mubr.msk.f32.mxu1 %vm1845_vm1, %v1844_v2  ;;  %v2014_v4 = vld [vmem:[#allocation7 + $0x18] sm:$0xff]  ;;  %v2018_v5 = vld [vmem:[#allocation7 + $0x10] sm:$0xff]  ;;  %v2026_v7 = vld [vmem:[#allocation7 + $0x8] sm:$0xff]  ;;  %v1846_v12 = vmov 0   ;;  %s2264_s8 = smov 64   ;;  %s1848_s13 = smov 96  }
  0x46   : > { %1454 = vmatpush3.msra.mxu1 %v2007_v1  ;;  %1442 = vmatprep.subr.mxu0 %v1844_v2  ;;  %v2029_v8 = vld [vmem:[#allocation4] sm:$0xff]  ;;  %v379_v13 = vld [vmem:[%s1995_s19] sm:$0x3]  ;;  %vm571_vm3 = vcmask 254976   ;;  %v1369_v43 = vld [vmem:[%s2000_s12 + $0x2] sm:$0x3] }
  0x47   : > { %1455 = vmatprep.subr.mxu1 %v1844_v2  ;;  %1443 = vmatpush3.msra.mxu0 %v2014_v4  ;;  %v2034_v10 = vld [vmem:[#allocation7] sm:$0xff]  ;;  %v380_v20 = vld [vmem:[%s2000_s12] sm:$0x3]  ;;  %v1368_v47 = vld [vmem:[%s1995_s19 + $0x2] sm:$0x3]  ;;  %s2263_s16 = sshll.u32 %s1829_s24, 7 }
  0x48   : > { %1456 = vmatpush3.msra.mxu1 %v2010_v3  ;;  %1444 = vmatprep.subr.mxu0 %v1844_v2  ;;  %v2074_v27 = vld [vmem:[%s2259_s4] ss:$0 sm:$0xff]  ;;  %s1201_s20 = sshll.u32 %s2004_s30, 4  ;;  %s1170_s27 = scalar_lea.sflag [#allocation11], %s1988_s14  ;;  %s2167_s20 = int_to_ptr.vmem [resolvable:$true] %s1201_s20 }
  0x49   : > { %1457 = vmatprep.subr.mxu1 %v1844_v2  ;;  %1445 = vmatpush3.msra.mxu0 %v2018_v5  ;;  %p2270_p11 = scmp.ne.s32.totalorder %s2265_s7, 0 }
  0x4a   : > { %1458 = vmatpush3.msra.mxu1 %v2021_v6  ;;  %v377_v9 = vld [vmem:[#allocation2] sm:$0x3]  ;;  %1446 = vmatprep.subr.mxu0 %v1844_v2  ;;  %v378_v11 = vld [vmem:[#allocation3] sm:$0x3] }
  0x4b   : > { %1459 = vmatprep.subr.mxu1 %v1844_v2  ;;  %1447 = vmatpush3.msra.mxu0 %v2026_v7 }
  0x4c   : > { %1460 = vmatpush3.msra.mxu1 %v2029_v8  ;;  %1448 = vmatprep.subr.mxu0 %v1844_v2 }
  0x4d   : > { %1462 = vmatmul.mubr.msk.f32.vlgmr.msra.gmra.mxu1 %vm381_vm2, %v377_v9  ;;  %1449 = vmatpush3.msra.mxu0 %v2034_v10 }
  0x4e   : > { %1450 = vmatprep.mubr.msk.f32.mxu0 %vm1845_vm1, %v1844_v2  ;;  %1464 = vmatprep.subr.mxu0 %v1844_v2 }
  0x4f   : > { %1451 = vmatmul.mubr.msk.f32.vlgmr.msra.gmra.mxu0 %vm381_vm2, %v378_v11  ;;  %1475 = vmatprep.subr.mxu1 %v1844_v2 }
  0x50   : > { %1465 = vmatpush3.msra.mxu0 %v2014_v4  ;;  %1472 = vmatprep.mubr.msk.f32.mxu0 %vm1845_vm1, %v1844_v2 }
  0x51   : > { %1466 = vmatprep.subr.mxu0 %v1844_v2  ;;  %1476 = vmatpush3.msra.mxu1 %v2007_v1 }
  0x52   : > { %1467 = vmatpush3.msra.mxu0 %v2018_v5  ;;  %1477 = vmatprep.subr.mxu1 %v1844_v2 }
  0x53   : > { %1468 = vmatprep.subr.mxu0 %v1844_v2  ;;  %1478 = vmatpush3.msra.mxu1 %v2010_v3 }
  0x54   : > { %1469 = vmatpush3.msra.mxu0 %v2026_v7  ;;  %1479 = vmatprep.subr.mxu1 %v1844_v2 }
  0x55   : > { %1470 = vmatprep.subr.mxu0 %v1844_v2  ;;  %1480 = vmatpush3.msra.mxu1 %v2021_v6 }
  0x56   : > { %1471 = vmatpush3.msra.mxu0 %v2034_v10  ;;  %1481 = vmatprep.subr.mxu1 %v1844_v2 }
  0x57   : > { %1482 = vmatpush3.msra.mxu1 %v2029_v8  ;;  %1483 = vmatprep.mubr.msk.f32.mxu1 %vm1845_vm1, %v1844_v2 }
  0x58   : > { %1486 = vmatprep.subr.mxu0 %v1844_v2  ;;  %1497 = vmatprep.subr.mxu1 %v1844_v2 }
  0x59   : > { %1621 = vset.pattern.permute.xlu0 %v1846_v12  ;;  %1622 = vset.pattern.permute.xlu1 %v1846_v12 }
 0x10d   : > { %v538_v14 = vpop.f32.mrf.mxu1 }
 0x10e   : > { %v542_v15 = vadd.f32 %v538_v14, %v379_v13 }
 0x10f   : > { %v1463_v16 = vpop.f32.mrf.mxu1  ;;  %v451_v17 = vpop.f32.mrf.mxu0 }
 0x110   : > { %1623 = vtanh.f32 %v542_v15  ;;  %v1367_v21 = vmul.f32 -1.442695, %v542_v15  ;;  %v452_v28 = vadd.f32 %v2074_v27, %v451_v17  ;;  %v1377_v17 = vld [vmem:[%s2000_s12 + $0x4] sm:$0x3] }
 0x111   : > { %v1452_v18 = vpop.f32.mrf.mxu0 }
 0x112   : > { %1625 = vpow2.f32 %v1367_v21  ;;  %v1365_v29 = vmul.f32 -1.442695, %v452_v28 }
 0x11d   : > { %v1624_v19 = vpop.eup %1623 }
 0x11e   : > { %552 = vrot.lane.b32.xlu0 %v1624_v19, %s2264_s8 }
 0x11f   : > { %v1626_v22 = vpop.eup %1625 }
 0x120   : > { %v546_v23 = vadd.f32 1.0, %v1626_v22 }
 0x122   : > { %464 = vperm.xlu0 %1621, %v380_v20   ;;  %1627 = vrcp.f32 %v546_v23 }
 0x123   : > { %1629 = vpow2.f32 %v1365_v29 }
 0x12f   : > { %v1628_v24 = vpop.eup %1627 }
 0x130   : > { %v1630_v30 = vpop.eup %1629 }
 0x131   : > { %v458_v31 = vadd.f32 1.0, %v1630_v30 }
 0x133   : > { %1631 = vrcp.f32 %v458_v31 }
 0x140   : > { %v1632_v32 = vpop.eup %1631 }
 0x141   : > { %v461_v34 = vsub.f32 %v378_v11, %v1632_v32 }
 0x190   : > { %v553_v25 = vpop.permute.xlu0 %552 }
 0x191   : > { %v555_v26 = vmul.f32 %v1628_v24, %v553_v25 }
 0x193   : > { %557 = vrot.lane.b32.xlu1 %v555_v26, %s1848_s13 }
 0x19d   : > { %v465_v33 = vpop.permute.xlu0 %464 }
 0x19e   : > { %v467_v35 = vmul.f32 %v1632_v32, %v465_v33 }
 0x1a0   : > { %v468_v36 = vadd.f32 %v467_v35, %v461_v34 }
 0x1a2   : > { %v550_v37 = vmul.f32 %v1628_v24, %v468_v36 }
 0x205   : > { %v558_v38 = vpop.permute.xlu1 %557 }
 0x206   : > { %v560_v39 = vadd.f32 %v558_v38, %v550_v37 }
 0x208   : > { %1633 = vtanh.f32 %v560_v39  ;;  %573 = vst.msk [vmem:[%s2004_s30] sm:$0x3] %vm571_vm3, %v560_v39  ;;  %1473 = vmatmul.mubr.msk.f32.vlgmr.msra.gmra.mxu0 %vm381_vm2, %v560_v39 }
 0x209   : > { %1487 = vmatpush3.msra.mxu0 %v2014_v4  ;;  %1494 = vmatprep.mubr.msk.f32.mxu0 %vm1845_vm1, %v1844_v2 }
 0x20a   : > { %1488 = vmatprep.subr.mxu0 %v1844_v2 }
 0x20b   : > { %1489 = vmatpush3.msra.mxu0 %v2018_v5 }
 0x20c   : > { %1490 = vmatprep.subr.mxu0 %v1844_v2 }
 0x20d   : > { %1491 = vmatpush3.msra.mxu0 %v2026_v7 }
 0x20e   : > { %1492 = vmatprep.subr.mxu0 %v1844_v2 }
 0x20f   : > { %1493 = vmatpush3.msra.mxu0 %v2034_v10 }
 0x210   : > { %1508 = vmatprep.subr.mxu0 %v1844_v2 }
 0x215   : > { %v1634_v40 = vpop.eup %1633 }
 0x216   : > { %563 = vrot.lane.b32.xlu1 %v1634_v40, %s2264_s8  ;;  %v1385_v40 = vld [vmem:[%s2000_s12 + $0x6] sm:$0x3]  ;;  %s1723_s12 = scalar_lea.vmem %s2167_s20, 128 }
 0x217   : > { %p1724_p10 = scmp.ne.s32.totalorder %s2167_s20, %s1723_s12 }
 0x219   : > { %p1725_p13 = pnand %p1724_p10, %p2270_p11 }
 0x21b   : > { %p1726_p0 = pneg %p1725_p13 }
 0x288   : > { %v564_v41 = vpop.permute.xlu1 %563 }
 0x289   : > { %v566_v42 = vmul.f32 %v1628_v24, %v564_v41 }
 0x28b   : > { %568 = vrot.lane.b32.xlu1 %v566_v42, %s2264_s8 }
 0x28f   : > { %660 = vperm.xlu1 %1622, %v1369_v43  }
 0x2c8   : > { %v647_v44 = vpop.f32.mrf.mxu0 }
 0x2c9   : > { %v648_v58 = vadd.f32 %v2074_v27, %v647_v44  ;;  %v1384_v44 = vld [vmem:[%s1995_s19 + $0x6] sm:$0x3] }
 0x2ca   : > { %v1474_v45 = vpop.f32.mrf.mxu0 }
 0x2cb   : > { %v1371_v59 = vmul.f32 -1.442695, %v648_v58 }
 0x2fd   : > { %v569_v46 = vpop.permute.xlu1 %568 }
 0x2fe   : > { %572 = vst.msk [vmem:[%s2002_s28] sm:$0x3] %vm571_vm3, %v569_v46  ;;  %1484 = vmatmul.mubr.msk.f32.vlgmr.msra.gmra.mxu1 %vm381_vm2, %v569_v46 }
 0x2ff   : > { %1498 = vmatpush3.msra.mxu1 %v2007_v1  ;;  %1505 = vmatprep.mubr.msk.f32.mxu1 %vm1845_vm1, %v1844_v2 }
 0x300   : > { %1499 = vmatprep.subr.mxu1 %v1844_v2 }
 0x301   : > { %1500 = vmatpush3.msra.mxu1 %v2010_v3 }
 0x302   : > { %1501 = vmatprep.subr.mxu1 %v1844_v2 }
 0x303   : > { %1502 = vmatpush3.msra.mxu1 %v2021_v6 }
 0x304   : > { %1503 = vmatprep.subr.mxu1 %v1844_v2 }
 0x305   : > { %1504 = vmatpush3.msra.mxu1 %v2029_v8 }
 0x306   : > { %1519 = vmatprep.subr.mxu1 %v1844_v2 }
 0x30a   : > { %v661_v62 = vpop.permute.xlu1 %660 }
 0x3be   : > { %v733_v48 = vpop.f32.mrf.mxu1 }
 0x3bf   : > { %v737_v49 = vadd.f32 %v1368_v47, %v733_v48 }
 0x3c0   : > { %v1485_v50 = vpop.f32.mrf.mxu1 }
 0x3c1   : > { %1635 = vtanh.f32 %v737_v49  ;;  %v1373_v52 = vmul.f32 -1.442695, %v737_v49 }
 0x3c3   : > { %1637 = vpow2.f32 %v1373_v52 }
 0x3ce   : > { %v1636_v51 = vpop.eup %1635 }
 0x3cf   : > { %747 = vrot.lane.b32.xlu0 %v1636_v51, %s2264_s8 }
 0x3d0   : > { %v1638_v53 = vpop.eup %1637 }
 0x3d1   : > { %v741_v54 = vadd.f32 1.0, %v1638_v53 }
 0x3d3   : > { %1639 = vrcp.f32 %v741_v54 }
 0x3d4   : > { %1641 = vpow2.f32 %v1371_v59 }
 0x3e0   : > { %v1640_v55 = vpop.eup %1639 }
 0x3e1   : > { %v1642_v60 = vpop.eup %1641 }
 0x3e2   : > { %v654_v61 = vadd.f32 1.0, %v1642_v60 }
 0x3e4   : > { %1643 = vrcp.f32 %v654_v61 }
 0x3f1   : > { %v1644_v63 = vpop.eup %1643 }
 0x3f2   : > { %v663_v0 = vmul.f32 %v1644_v63, %v661_v62  ;;  %v657_v9 = vsub.f32 %v560_v39, %v1644_v63 }
 0x3f4   : > { %v664_v11 = vadd.f32 %v663_v0, %v657_v9 }
 0x3f6   : > { %v745_v12 = vmul.f32 %v1640_v55, %v664_v11 }
 0x441   : > { %v748_v56 = vpop.permute.xlu0 %747 }
 0x442   : > { %v750_v57 = vmul.f32 %v1640_v55, %v748_v56 }
 0x444   : > { %752 = vrot.lane.b32.xlu0 %v750_v57, %s1848_s13 }
 0x4b6   : > { %v753_v13 = vpop.permute.xlu0 %752 }
 0x4b7   : > { %v755_v14 = vadd.f32 %v753_v13, %v745_v12 }
 0x4b9   : > { %1645 = vtanh.f32 %v755_v14  ;;  %1375 = vst.msk [vmem:[%s2004_s30 + $0x2] sm:$0x3] %vm571_vm3, %v755_v14  ;;  %1495 = vmatmul.mubr.msk.f32.vlgmr.msra.gmra.mxu0 %vm381_vm2, %v755_v14 }
 0x4ba   : > { %1509 = vmatpush3.msra.mxu0 %v2014_v4  ;;  %1516 = vmatprep.mubr.msk.f32.mxu0 %vm1845_vm1, %v1844_v2 }
 0x4bb   : > { %1510 = vmatprep.subr.mxu0 %v1844_v2 }
 0x4bc   : > { %1511 = vmatpush3.msra.mxu0 %v2018_v5 }
 0x4bd   : > { %1512 = vmatprep.subr.mxu0 %v1844_v2 }
 0x4be   : > { %1513 = vmatpush3.msra.mxu0 %v2026_v7  ;;  %v1376_v7 = vld [vmem:[%s1995_s19 + $0x4] sm:$0x3]  ;;  %s2164_s19 = scalar_lea.hbm %s2261_s6, %s2263_s16 }
 0x4bf   : > { %1514 = vmatprep.subr.mxu0 %v1844_v2 }
 0x4c0   : > { %1515 = vmatpush3.msra.mxu0 %v2034_v10 }
 0x4c6   : > { %v1646_v15 = vpop.eup %1645 }
 0x4c7   : > { %758 = vrot.lane.b32.xlu1 %v1646_v15, %s2264_s8 }
 0x539   : > { %v759_v4 = vpop.permute.xlu1 %758 }
 0x53a   : > { %v761_v16 = vmul.f32 %v1640_v55, %v759_v4 }
 0x53c   : > { %763 = vrot.lane.b32.xlu0 %v761_v16, %s2264_s8 }
 0x540   : > { %856 = vperm.xlu0 %1621, %v1377_v17  }
 0x579   : > { %v843_v18 = vpop.f32.mrf.mxu0 }
 0x57b   : > { %v1496_v5 = vpop.f32.mrf.mxu0 }
 0x5ae   : > { %v764_v19 = vpop.permute.xlu0 %763 }
 0x5af   : > { %1374 = vst.msk [vmem:[%s2002_s28 + $0x2] sm:$0x3] %vm571_vm3, %v764_v19  ;;  %1506 = vmatmul.mubr.msk.f32.vlgmr.msra.gmra.mxu1 %vm381_vm2, %v764_v19 }
 0x5b0   : > { %1520 = vmatpush3.msra.mxu1 %v2007_v1  ;;  %1527 = vmatprep.mubr.msk.f32.mxu1 %vm1845_vm1, %v1844_v2 }
 0x5b1   : > { %1521 = vmatprep.subr.mxu1 %v1844_v2 }
 0x5b2   : > { %1522 = vmatpush3.msra.mxu1 %v2010_v3 }
 0x5b3   : > { %1523 = vmatprep.subr.mxu1 %v1844_v2 }
 0x5b4   : > { %1524 = vmatpush3.msra.mxu1 %v2021_v6 }
 0x5b5   : > { %1525 = vmatprep.subr.mxu1 %v1844_v2  ;;  %v844_v2 = vadd.f32 %v2074_v27, %v843_v18 }
 0x5b6   : > { %1526 = vmatpush3.msra.mxu1 %v2029_v8 }
 0x5b7   : > { %v1379_v8 = vmul.f32 -1.442695, %v844_v2 }
 0x5bb   : > { %v857_v29 = vpop.permute.xlu0 %856 }
 0x66f   : > { %v929_v10 = vpop.f32.mrf.mxu1 }
 0x670   : > { %v933_v20 = vadd.f32 %v1376_v7, %v929_v10 }
 0x671   : > { %v1507_v21 = vpop.f32.mrf.mxu1 }
 0x672   : > { %1647 = vtanh.f32 %v933_v20  ;;  %v1381_v22 = vmul.f32 -1.442695, %v933_v20 }
 0x674   : > { %1649 = vpow2.f32 %v1381_v22 }
 0x67f   : > { %v1648_v1 = vpop.eup %1647 }
 0x680   : > { %943 = vrot.lane.b32.xlu1 %v1648_v1, %s2264_s8 }
 0x681   : > { %v1650_v23 = vpop.eup %1649 }
 0x682   : > { %v937_v3 = vadd.f32 1.0, %v1650_v23 }
 0x684   : > { %1651 = vrcp.f32 %v937_v3 }
 0x685   : > { %1653 = vpow2.f32 %v1379_v8 }
 0x691   : > { %v1652_v24 = vpop.eup %1651 }
 0x692   : > { %v1654_v26 = vpop.eup %1653 }
 0x693   : > { %v850_v28 = vadd.f32 1.0, %v1654_v26 }
 0x695   : > { %1655 = vrcp.f32 %v850_v28 }
 0x6a2   : > { %v1656_v30 = vpop.eup %1655 }
 0x6a3   : > { %v859_v31 = vmul.f32 %v1656_v30, %v857_v29  ;;  %v853_v32 = vsub.f32 %v755_v14, %v1656_v30 }
 0x6a5   : > { %v860_v33 = vadd.f32 %v859_v31, %v853_v32 }
 0x6a7   : > { %v941_v34 = vmul.f32 %v1652_v24, %v860_v33 }
 0x6f2   : > { %v944_v25 = vpop.permute.xlu1 %943 }
 0x6f3   : > { %v946_v6 = vmul.f32 %v1652_v24, %v944_v25 }
 0x6f5   : > { %948 = vrot.lane.b32.xlu1 %v946_v6, %s1848_s13 }
 0x767   : > { %v949_v35 = vpop.permute.xlu1 %948 }
 0x768   : > { %v951_v36 = vadd.f32 %v949_v35, %v941_v34 }
 0x76a   : > { %1657 = vtanh.f32 %v951_v36  ;;  %1383 = vst.msk [vmem:[%s2004_s30 + $0x4] sm:$0x3] %vm571_vm3, %v951_v36  ;;  %1517 = vmatmul.mubr.msk.f32.vlgmr.msra.gmra.mxu0 %vm381_vm2, %v951_v36 }
 0x777   : > { %v1658_v37 = vpop.eup %1657 }
 0x778   : > { %954 = vrot.lane.b32.xlu0 %v1658_v37, %s2264_s8 }
 0x7ea   : > { %v955_v38 = vpop.permute.xlu0 %954 }
 0x7eb   : > { %v957_v39 = vmul.f32 %v1652_v24, %v955_v38 }
 0x7ed   : > { %959 = vrot.lane.b32.xlu1 %v957_v39, %s2264_s8 }
 0x7f1   : > { %1052 = vperm.xlu1 %1622, %v1385_v40  }
 0x82a   : > { %v1039_v41 = vpop.f32.mrf.mxu0 }
 0x82b   : > { %v1040_v55 = vadd.f32 %v2074_v27, %v1039_v41 }
 0x82c   : > { %v1518_v42 = vpop.f32.mrf.mxu0 }
 0x82d   : > { %v1387_v56 = vmul.f32 -1.442695, %v1040_v55 }
 0x85f   : > { %v960_v43 = vpop.permute.xlu1 %959 }
 0x860   : > { %1382 = vst.msk [vmem:[%s2002_s28 + $0x4] sm:$0x3] %vm571_vm3, %v960_v43  ;;  %1528 = vmatmul.mubr.msk.f32.vlgmr.msra.gmra.mxu1 %vm381_vm2, %v960_v43 }
 0x86c   : > { %v1053_v59 = vpop.permute.xlu1 %1052 }
 0x920   : > { %v1125_v45 = vpop.f32.mrf.mxu1 }
 0x921   : > { %v1129_v46 = vadd.f32 %v1384_v44, %v1125_v45 }
 0x922   : > { %v1529_v47 = vpop.f32.mrf.mxu1 }
 0x923   : > { %1659 = vtanh.f32 %v1129_v46  ;;  %v1389_v49 = vmul.f32 -1.442695, %v1129_v46 }
 0x925   : > { %1661 = vpow2.f32 %v1389_v49 }
 0x930   : > { %v1660_v48 = vpop.eup %1659 }
 0x931   : > { %1139 = vrot.lane.b32.xlu0 %v1660_v48, %s2264_s8 }
 0x932   : > { %v1662_v50 = vpop.eup %1661 }
 0x933   : > { %v1133_v51 = vadd.f32 1.0, %v1662_v50 }
 0x935   : > { %1663 = vrcp.f32 %v1133_v51 }
 0x936   : > { %1665 = vpow2.f32 %v1387_v56 }
 0x942   : > { %v1664_v52 = vpop.eup %1663 }
 0x943   : > { %v1666_v57 = vpop.eup %1665 }
 0x944   : > { %v1046_v58 = vadd.f32 1.0, %v1666_v57 }
 0x946   : > { %1667 = vrcp.f32 %v1046_v58 }
 0x953   : > { %v1668_v60 = vpop.eup %1667 }
 0x954   : > { %v1055_v61 = vmul.f32 %v1668_v60, %v1053_v59  ;;  %v1049_v62 = vsub.f32 %v951_v36, %v1668_v60 }
 0x956   : > { %v1056_v63 = vadd.f32 %v1055_v61, %v1049_v62 }
 0x958   : > { %v1137_v0 = vmul.f32 %v1664_v52, %v1056_v63 }
 0x9a3   : > { %v1140_v53 = vpop.permute.xlu0 %1139 }
 0x9a4   : > { %v1142_v54 = vmul.f32 %v1664_v52, %v1140_v53 }
 0x9a6   : > { %1144 = vrot.lane.b32.xlu0 %v1142_v54, %s1848_s13  ;;  %s1849_s13 = smov [#allocation10]  }
 0x9a7   : > { %s1727_s15 = sshll.u32 %s1849_s13, 4  ;;  %s1728_s15 = int_to_ptr.vmem [resolvable:$false] %s1727_s15 }
 0x9a8   : > { %s1729_s11 = scalar_lea.vmem %s1728_s15, 256  ;;  %p1730_p6 = scmp.lt.s32.totalorder %s2167_s20, %s1728_s15 }
 0x9a9   : > { %p1731_p7 = scmp.lt.s32.totalorder %s1729_s11, %s1723_s12 }
 0x9ab   : > { %p1732_p9 = por %p1731_p7, %p1730_p6 }
 0x9ad   : > { %p1733_p12 = pnand %p1732_p9, %p1726_p0 }
 0xa18   : > { %v1145_v9 = vpop.permute.xlu0 %1144 }
 0xa19   : > { %v1147_v11 = vadd.f32 %v1145_v9, %v1137_v0 }
 0xa1b   : > { %1669 = vtanh.f32 %v1147_v11  ;;  %1391 = vst.msk [vmem:[%s2004_s30 + $0x6] sm:$0x3] %vm571_vm3, %v1147_v11  ;;  %1163 = vst.msk [vmem:[#allocation3] sm:$0x3] %vm571_vm3, %v1147_v11 }
 0xa28   : > { %v1670_v27 = vpop.eup %1669 }
 0xa29   : > { %1150 = vrot.lane.b32.xlu1 %v1670_v27, %s2264_s8 }
 0xa2a   : > { %1736 = shalt.err (!%p1733_p12)
}
 0xa2b   : > { %s1737_s30 = scalar_lea.hbm %s2164_s19, 128  ;;  %s1741_s13 = scalar_lea.hbm %s2261_s6, 384 }
 0xa2c   : > { %p1738_p1 = scmp.ne.s32.totalorder %s2164_s19, %s1737_s30  ;;  %p1742_p3 = scmp.lt.s32.totalorder %s2164_s19, %s2261_s6 }
 0xa2d   : > { %p1743_p4 = scmp.lt.s32.totalorder %s1741_s13, %s1737_s30 }
 0xa2e   : > { %p1739_p2 = pnand %p1738_p1, %p2270_p11 }
 0xa2f   : > { %p1744_p8 = por %p1743_p4, %p1742_p3 }
 0xa30   : > { %p1740_p5 = pneg %p1739_p2 }
 0xa32   : > { %p1745_p10 = pnand %p1744_p8, %p1740_p5 }
 0xa34   : > { %1748 = shalt.err (!%p1745_p10)
}
 0xa35   : > { %s1850_s12 = smov 32   ;;  %s1851_s15 = smov 2  }
 0xa36   : > { %1539 = dma.vmem_to_hbm [thread:$0]  (%p2270_p11), %s2167_s20, 128, %s2164_s19, %s1170_s27, %s1850_s12, %s1850_s12, %s1851_s15  }
 0xa37   : > { %s2271_s8 = smov 64   ;;  %s1184_s16 = sshll.u32 %s2002_s28, 4  ;;  %s2204_s16 = int_to_ptr.vmem [resolvable:$true] %s1184_s16 }
 0xa38   : > { %s2272_s11 = sshll.u32 %s1829_s24, 7  ;;  %s1165_s19 = scalar_lea.sflag [#allocation6], %s1988_s14 }
 0xa39   : > { %s2202_s18 = scalar_lea.hbm %s2260_s5, %s2272_s11  ;;  %s1749_s20 = scalar_lea.vmem %s2204_s16, 128 }
 0xa3a   : > { %p1750_p13 = scmp.ne.s32.totalorder %s2204_s16, %s1749_s20  ;;  %s1852_s24 = smov [#allocation9]  }
 0xa3b   : > { %s1753_s27 = sshll.u32 %s1852_s24, 4  ;;  %s1754_s27 = int_to_ptr.vmem [resolvable:$false] %s1753_s27 }
 0xa3c   : > { %p1751_p0 = pnand %p1750_p13, %p2270_p11  ;;  %s1755_s13 = scalar_lea.vmem %s1754_s27, 256 }
 0xa3d   : > { %p1756_p7 = scmp.lt.s32.totalorder %s2204_s16, %s1754_s27  ;;  %p1757_p9 = scmp.lt.s32.totalorder %s1755_s13, %s1749_s20 }
 0xa3e   : > { %p1752_p6 = pneg %p1751_p0 }
 0xa3f   : > { %p1758_p12 = por %p1757_p9, %p1756_p7 }
 0xa41   : > { %p1759_p1 = pnand %p1758_p12, %p1752_p6 }
 0xa9b   : > { %v1151_v12 = vpop.permute.xlu1 %1150 }
 0xa9c   : > { %v1153_v13 = vmul.f32 %v1664_v52, %v1151_v12 }
 0xa9e   : > { %1155 = vrot.lane.b32.xlu0 %v1153_v13, %s2271_s8 }
 0xb10   : > { %v1156_v14 = vpop.permute.xlu0 %1155 }
 0xb11   : > { %1390 = vst.msk [vmem:[%s2002_s28 + $0x6] sm:$0x3] %vm571_vm3, %v1156_v14  ;;  %1162 = vst.msk [vmem:[#allocation2] sm:$0x3] %vm571_vm3, %v1156_v14 }
 0xb12   : > { %1762 = shalt.err (!%p1759_p1)
}
 0xb13   : > { %s1763_s28 = scalar_lea.hbm %s2202_s18, 128  ;;  %s1767_s11 = scalar_lea.hbm %s2260_s5, 384 }
 0xb14   : > { %p1764_p2 = scmp.ne.s32.totalorder %s2202_s18, %s1763_s28  ;;  %p1768_p4 = scmp.lt.s32.totalorder %s2202_s18, %s2260_s5 }
 0xb15   : > { %p1769_p8 = scmp.lt.s32.totalorder %s1767_s11, %s1763_s28 }
 0xb16   : > { %p1765_p5 = pnand %p1764_p2, %p2270_p11 }
 0xb17   : > { %p1770_p10 = por %p1769_p8, %p1768_p4 }
 0xb18   : > { %p1766_p3 = pneg %p1765_p5 }
 0xb1a   : > { %p1771_p13 = pnand %p1770_p10, %p1766_p3 }
 0xb1c   : > { %1774 = shalt.err (!%p1771_p13)
}
 0xb1d   : > { %1538 = dma.vmem_to_hbm [thread:$0]  (%p2270_p11), %s2204_s16, 128, %s2202_s18, %s1165_s19, %s1850_s12, %s1850_s12, %s1851_s15  }
 0xb1e PF: > { %p1560_p0 = scmp.ge.s32.totalorder %s1837_s26, 2  ;;  %s1216_s20 = sand.u32 1, %s1817_s21  }
 0xb1f   : > { %p2273_p6 = scmp.ne.s32.totalorder %s2266_s9, 0  ;;  %s1217_s24 = scalar_lea.sflag [#allocation6], %s1216_s20 }
 0xb21   : > { %p1550_p7 = pnand %p1560_p0, %p2273_p6 }
 0xb23   : > { %p1551_p9 = pneg %p1550_p7 }
 0xb25   : > { %1808 = dma.done.wait (%p1551_p9), %s1217_s24, 128  }
 0xb26   : > { %1810 = vsyncadd (%p1551_p9), %s1217_s24, 4294967168  ;;  %s1226_s27 = scalar_lea.sflag [#allocation11], %s1216_s20 }
 0xb27   : > { %1812 = dma.done.wait (%p1551_p9), %s1226_s27, 128  }
 0xb28   : > { %1814 = vsyncadd (%p1551_p9), %s1226_s27, 4294967168  ;;  %s25_s26 = sadd.s32 1, %s1837_s26   ;;  %s2274_s21 = smov %s1821_s22 }
 0xb29   : > { %p22_p12 = scmp.ge.s32.totalorder %s25_s26, 5   ;;  %s2275_s22 = smov %s1825_s23 }
 0xb2a   : > { %s2276_s23 = smov %s1941_s10  ;;  %s2277_s24 = smov %s1833_s25 }
 0xb2b   : > { %s2278_s25 = smov %s2280_s29  ;;  %24 = sbr.rel (!%p22_p12) target bundleno = 8 (0x8), region = 120 }
 0xb30   :  { %1231 = vsyncpa [#allocation5], 1 }
 0xb31   :  { %1233 = vsyncpa [#allocation5 + $0x1], 1 }
 0xb32   :  { %1234 = vsyncpa [#allocation8], 1 }
 0xb33   :  { %1235 = vsyncpa [#allocation6], 1 }
 0xb34   :  { %1237 = vsyncpa [#allocation6 + $0x1], 1 }
 0xb35   :  { %1238 = vsyncpa [#allocation11], 1 }
 0xb36   :  { %1240 = vsyncpa [#allocation11 + $0x1], 1 }

</bundles_post_ra>
